<compile_context>
chip_gen: v5e
topology: v5e:2x2
jax: 0.10.0
libtpu: 0.0.40
codegen_flags: <defaults>
</compile_context>

<pallas_src>
import numpy as np
import jax
import jax.numpy as jnp
from jax.experimental import pallas as pl
from jax.experimental.pallas import tpu as pltpu

_reduction_modes = ['none', 'mean', 'sum']

_SUBL = 8
_LANES = 128
_GROUP = _SUBL * _LANES          # 1024 elements per (8, 128) vreg-group
_MAX_BLOCK_GROUPS = 256          # 256 groups * 1024 elem * 4 B = 1 MiB / array / step
_N_CORES = 2                     # per-core partial accumulators (v7x megacore)


def _cdiv(a, b):
    return -(-a // b)


def _flatten_pad(a, groups):
    """Flatten to 1-D f32, zero-pad, reshape to lane-dense (groups, 8, 128)."""
    flat = jnp.ravel(a).astype(jnp.float32)
    total = groups * _GROUP
    pad = total - flat.shape[0]
    if pad:
        flat = jnp.pad(flat, (0, pad))   # zero padding contributes 0 to |x - y|
    return flat.reshape(groups, _SUBL, _LANES)


# ---------------------------------------------------------------------------
# Reduction kernel ('mean' / 'sum'): accumulating sum of |x - y| [* w]
# ---------------------------------------------------------------------------
def _make_l1_sum_kernel(has_weight):
    def kernel(*refs):
        if has_weight:
            x_ref, y_ref, w_ref, out_ref = refs
        else:
            x_ref, y_ref, out_ref = refs
            w_ref = None

        step = pl.program_id(1)

        @pl.when(step == 0)
        def _init():
            out_ref[...] = jnp.zeros_like(out_ref)

        d = jnp.abs(x_ref[...] - y_ref[...])
        if has_weight:
            d = d * w_ref[...]
        # (block_groups, 8, 128) -> (1, 8, 128): leading-axis reduce, VPU adds
        # only; out_ref stays resident in VMEM across the reduce axis.
        out_ref[...] += jnp.sum(d, axis=0, keepdims=True)

    return kernel


def _l1_abs_sum(pred, target, weight=None):
    """sum(|pred - target| [* weight]) via a tiled, accumulating Pallas kernel."""
    n = int(pred.size)
    n_groups = max(1, _cdiv(n, _GROUP))
    block_groups = min(_MAX_BLOCK_GROUPS, n_groups)
    n_blocks = _cdiv(n_groups, block_groups)
    n_cores = _N_CORES if n_blocks >= _N_CORES else 1
    steps = _cdiv(n_blocks, n_cores)
    groups_padded = n_cores * steps * block_groups

    args = [_flatten_pad(pred, groups_padded), _flatten_pad(target, groups_padded)]
    has_weight = weight is not None
    if has_weight:
        args.append(_flatten_pad(weight, groups_padded))

    in_spec = pl.BlockSpec((block_groups, _SUBL, _LANES),
                           lambda c, i, s=steps: (c * s + i, 0, 0))
    partials = pl.pallas_call(
        _make_l1_sum_kernel(has_weight),
        out_shape=jax.ShapeDtypeStruct((n_cores, _SUBL, _LANES), jnp.float32),
        grid=(n_cores, steps),
        in_specs=[in_spec] * len(args),
        out_specs=pl.BlockSpec((1, _SUBL, _LANES), lambda c, i: (c, 0, 0)),
        compiler_params=pltpu.CompilerParams(
            dimension_semantics=("parallel", "arbitrary")),
    )(*args)
    # Single tiny cross-lane reduction, once, outside the grid loop.
    return jnp.sum(partials)


# ---------------------------------------------------------------------------
# Element-wise kernel (reduction='none')
# ---------------------------------------------------------------------------
def _l1_map_kernel(x_ref, y_ref, o_ref):
    o_ref[...] = jnp.abs(x_ref[...] - y_ref[...])


def _l1_map_w_kernel(x_ref, y_ref, w_ref, o_ref):
    o_ref[...] = jnp.abs(x_ref[...] - y_ref[...]) * w_ref[...]


def _l1_abs_map(pred, target, weight=None):
    """Element-wise |pred - target| [* weight] (reduction='none')."""
    n = int(pred.size)
    n_groups = max(1, _cdiv(n, _GROUP))
    block_groups = min(_MAX_BLOCK_GROUPS, n_groups)
    n_blocks = _cdiv(n_groups, block_groups)
    groups_padded = n_blocks * block_groups

    args = [_flatten_pad(pred, groups_padded), _flatten_pad(target, groups_padded)]
    kernel = _l1_map_kernel
    if weight is not None:
        args.append(_flatten_pad(weight, groups_padded))
        kernel = _l1_map_w_kernel

    spec = pl.BlockSpec((block_groups, _SUBL, _LANES), lambda i: (i, 0, 0))
    out = pl.pallas_call(
        kernel,
        out_shape=jax.ShapeDtypeStruct((groups_padded, _SUBL, _LANES), jnp.float32),
        grid=(n_blocks,),
        in_specs=[spec] * len(args),
        out_specs=spec,
        compiler_params=pltpu.CompilerParams(dimension_semantics=("parallel",)),
    )(*args)
    return out.reshape(-1)[:n].reshape(pred.shape)


# ---------------------------------------------------------------------------
# Public API mirroring the PyTorch module
# ---------------------------------------------------------------------------
def l1_loss(pred, target, weight=None, reduction='mean'):
    if reduction not in _reduction_modes:
        raise ValueError(f'Unsupported reduction mode: {reduction}. '
                         f'Supported ones are: {_reduction_modes}')
    if reduction == 'none':
        return _l1_abs_map(pred, target, weight)
    total = _l1_abs_sum(pred, target, weight)
    if reduction == 'sum':
        return total
    # reduction == 'mean'
    # TODO(synk): the spec's `l1_loss` helper body was not provided; with a
    # weight this uses a plain mean over all elements (F.l1_loss-style), not a
    # weight-sum-normalized mean.
    return total / pred.size


class L1Loss:
    """L1 (mean absolute error, MAE) loss — Pallas TPU forward."""

    def __init__(self, loss_weight=1.0, reduction='mean'):
        if reduction not in _reduction_modes:
            raise ValueError(f'Unsupported reduction mode: {reduction}. '
                             f'Supported ones are: {_reduction_modes}')
        self.loss_weight = loss_weight
        self.reduction = reduction

    def __call__(self, pred, target, weight=None, **kwargs):
        return self.loss_weight * l1_loss(pred, target, weight,
                                          reduction=self.reduction)


if __name__ == "__main__":
    key = jax.random.PRNGKey(0)
    kx, ky, kw = jax.random.split(key, 3)
    B, C, H, W = 2, 4, 16, 16
    x = jax.random.normal(kx, (B, C, H, W), dtype=jnp.float32)
    y = jax.random.normal(ky, (B, C, H, W), dtype=jnp.float32)
    w = jax.random.uniform(kw, (B, C, H, W), dtype=jnp.float32)

    # Default path: reduction='mean', weight=None, loss_weight=1.0.
    loss = L1Loss(loss_weight=1.0, reduction='mean')(x, y)
    jax.block_until_ready(loss)
    np.testing.assert_allclose(np.asarray(loss),
                               np.asarray(jnp.mean(jnp.abs(x - y))),
                               rtol=1e-5, atol=1e-5)

    # 'sum' reduction.
    loss_sum = L1Loss(reduction='sum')(x, y)
    jax.block_until_ready(loss_sum)
    np.testing.assert_allclose(np.asarray(loss_sum),
                               np.asarray(jnp.sum(jnp.abs(x - y))),
                               rtol=1e-5, atol=1e-4)

    # 'none' reduction.
    loss_none = L1Loss(reduction='none')(x, y)
    jax.block_until_ready(loss_none)
    np.testing.assert_allclose(np.asarray(loss_none),
                               np.asarray(jnp.abs(x - y)),
                               rtol=1e-6, atol=1e-6)

    # Element-wise weighted path (plain mean over all elements).
    loss_w = L1Loss(reduction='mean')(x, y, weight=w)
    jax.block_until_ready(loss_w)
    np.testing.assert_allclose(np.asarray(loss_w),
                               np.asarray(jnp.mean(jnp.abs(x - y) * w)),
                               rtol=1e-5, atol=1e-5)

    print("KERNEL_OK")
</pallas_src>

<mosaic_0001>
module attributes {stable_mosaic.version = 11 : i64} {
  func.func @kernel(%arg0: i32, %arg1: i32, %arg2: memref<2x8x128xf32, #tpu.memory_space<vmem>>, %arg3: memref<2x8x128xf32, #tpu.memory_space<vmem>>, %arg4: memref<1x8x128xf32, #tpu.memory_space<vmem>>) attributes {dimension_semantics = [#tpu.dimension_semantics<parallel>, #tpu.dimension_semantics<arbitrary>], iteration_bounds = array<i64: 1, 1>, scalar_prefetch = 0 : i64, scratch_operands = 0 : i64, tpu.core_type = #tpu.core_type<tc>, window_params = [{transform_indices = @transform_0, window_bounds = array<i64: 2, 8, 128>}, {transform_indices = @transform_1, window_bounds = array<i64: 2, 8, 128>}, {transform_indices = @transform_2, window_bounds = array<i64: 1, 8, 128>}]} {
    %c0_i32 = arith.constant 0 : i32
    %0 = arith.cmpi eq, %arg1, %c0_i32 : i32
    %1 = arith.extui %0 : i1 to i32
    %c0_i32_0 = arith.constant 0 : i32
    %2 = arith.cmpi ne, %1, %c0_i32_0 : i32
    scf.if %2 {
      %cst_12 = arith.constant 0.000000e+00 : f32
      %12 = vector.broadcast %cst_12 : f32 to vector<1x8x128xf32>
      %c0_13 = arith.constant 0 : index
      %c0_14 = arith.constant 0 : index
      %c0_15 = arith.constant 0 : index
      %13 = vector.load %arg4[%c0_13, %c0_14, %c0_15] : memref<1x8x128xf32, #tpu.memory_space<vmem>>, vector<1x8x128xf32>
      tpu.vector_store %arg4[%c0_13, %c0_14, %c0_15], %12 {strides = array<i32>} : memref<1x8x128xf32, #tpu.memory_space<vmem>>, vector<1x8x128xf32>,
    } else {
    }
    %c0 = arith.constant 0 : index
    %c0_1 = arith.constant 0 : index
    %c0_2 = arith.constant 0 : index
    %3 = vector.load %arg2[%c0, %c0_1, %c0_2] : memref<2x8x128xf32, #tpu.memory_space<vmem>>, vector<2x8x128xf32>
    %c0_3 = arith.constant 0 : index
    %c0_4 = arith.constant 0 : index
    %c0_5 = arith.constant 0 : index
    %4 = vector.load %arg3[%c0_3, %c0_4, %c0_5] : memref<2x8x128xf32, #tpu.memory_space<vmem>>, vector<2x8x128xf32>
    %5 = arith.subf %3, %4 : vector<2x8x128xf32>
    %6 = math.absf %5 : vector<2x8x128xf32>
    %c0_6 = arith.constant 0 : index
    %c0_7 = arith.constant 0 : index
    %c0_8 = arith.constant 0 : index
    %7 = vector.load %arg4[%c0_6, %c0_7, %c0_8] : memref<1x8x128xf32, #tpu.memory_space<vmem>>, vector<1x8x128xf32>
    %cst = arith.constant dense<0.000000e+00> : vector<8x128xf32>
    %8 = vector.multi_reduction <add>, %6, %cst [0] : vector<2x8x128xf32> to vector<8x128xf32>
    %9 = vector.shape_cast %8 : vector<8x128xf32> to vector<1x8x128xf32>
    %10 = arith.addf %7, %9 : vector<1x8x128xf32>
    %c0_9 = arith.constant 0 : index
    %c0_10 = arith.constant 0 : index
    %c0_11 = arith.constant 0 : index
    %11 = vector.load %arg4[%c0_9, %c0_10, %c0_11] : memref<1x8x128xf32, #tpu.memory_space<vmem>>, vector<1x8x128xf32>
    tpu.vector_store %arg4[%c0_9, %c0_10, %c0_11], %10 {strides = array<i32>} : memref<1x8x128xf32, #tpu.memory_space<vmem>>, vector<1x8x128xf32>,
    return
  }
  func.func @transform_0(%arg0: i32, %arg1: i32) -> (i32, i32, i32) {
    %c1_i32 = arith.constant 1 : i32
    %0 = arith.muli %arg0, %c1_i32 : i32
    %1 = arith.addi %0, %arg1 : i32
    %c0_i32 = arith.constant 0 : i32
    %c0_i32_0 = arith.constant 0 : i32
    %c0_i32_1 = arith.constant 0 : i32
    return %1, %c0_i32, %c0_i32_0 : i32, i32, i32
  }
  func.func @transform_1(%arg0: i32, %arg1: i32) -> (i32, i32, i32) {
    %c1_i32 = arith.constant 1 : i32
    %0 = arith.muli %arg0, %c1_i32 : i32
    %1 = arith.addi %0, %arg1 : i32
    %c0_i32 = arith.constant 0 : i32
    %c0_i32_0 = arith.constant 0 : i32
    %c0_i32_1 = arith.constant 0 : i32
    return %1, %c0_i32, %c0_i32_0 : i32, i32, i32
  }
  func.func @transform_2(%arg0: i32, %arg1: i32) -> (i32, i32, i32) {
    %c0_i32 = arith.constant 0 : i32
    %c0_i32_0 = arith.constant 0 : i32
    %c0_i32_1 = arith.constant 0 : i32
    return %arg0, %c0_i32, %c0_i32_0 : i32, i32, i32
  }
}

</mosaic_0001>

<bundles_post_ra>
// kernel: tpu_custom_call.1
= control target key start
LH: loop header
LB: loop body
LE: loop exit
PB: predicated region body
PF: predicated region fallthrough
CT: control target
= control target key end

     0   :  { %7 = vsyncpa [#allocation3], 0  ;;  %s204_s0 = inlined_call_operand.hbm [shape: f32[2,8,128], index: 0, kind: input, shape index: {}]   ;;  %s205_s1 = inlined_call_operand.hbm [shape: f32[2,8,128], index: 1, kind: input, shape index: {}]   ;;  %s206_s2 = inlined_call_operand.hbm [shape: f32[1,8,128], index: 2, kind: output, shape index: {}]  }
   0x1   :  { %8 = vsyncpa [#allocation6], 0 }
   0x2   :  { %9 = vsyncpa [#allocation4], 0  ;;  %s18_s11 = sshll.u32 %s204_s0, 4  ;;  %s175_s12 = smov [#allocation2]   ;;  %s19_s11 = int_to_ptr.hbm [resolvable:$true] %s18_s11 }
   0x3   :  { %s20_s13 = sshll.u32 %s175_s12, 4  ;;  %s35_s16 = sshll.u32 %s205_s1, 4  ;;  %s21_s13 = int_to_ptr.vmem [resolvable:$true] %s20_s13  ;;  %s36_s16 = int_to_ptr.hbm [resolvable:$true] %s35_s16 }
   0x4   :  { %s176_s17 = smov 128   ;;  %s177_s18 = smov 8  }
   0x5   :  { %26 = dma.hbm_to_vmem [thread:$0]  %s19_s11, 256, %s21_s13, [#allocation3], %s176_s17, %s176_s17, %s177_s18  }
   0x6   :  { %s178_s19 = smov [#allocation5]  }
   0x7   :  { %s37_s20 = sshll.u32 %s178_s19, 4  ;;  %s38_s20 = int_to_ptr.vmem [resolvable:$true] %s37_s20 }
   0x8   :  { %43 = dma.hbm_to_vmem [thread:$0]  %s36_s16, 256, %s38_s20, [#allocation6], %s176_s17, %s176_s17, %s177_s18  }
   0x9   :  { %169 = dma.done.wait [#allocation3], 256  }
   0xa   :  { %170 = vsyncadd [#allocation3], 4294967040 }
   0xb   :  { %171 = dma.done.wait [#allocation6], 256  }
   0xc   :  { %172 = vsyncadd [#allocation6], 4294967040  ;;  %v61_v0 = vld [vmem:[#allocation2] sm:$0xff]  ;;  %v62_v1 = vld [vmem:[#allocation2 + $0x8] sm:$0xff]  ;;  %s179_s0 = smov [#allocation7]   ;;  %s80_s23 = sshll.u32 %s206_s2, 4  ;;  %s81_s23 = int_to_ptr.hbm [resolvable:$true] %s80_s23 }
   0xd   :  { %v63_v2 = vld [vmem:[#allocation5] sm:$0xff]  ;;  %v64_v3 = vld [vmem:[#allocation5 + $0x8] sm:$0xff]  ;;  %s78_s1 = sshll.u32 %s179_s0, 4  ;;  %s79_s1 = int_to_ptr.vmem [resolvable:$true] %s78_s1 }
   0xe   :  { %v65_v4 = vsub.f32 %v61_v0, %v63_v2  ;;  %v66_v5 = vsub.f32 %v62_v1, %v64_v3 }
  0x10   :  { %v67_v6 = vand.u32 2147483647, %v65_v4  ;;  %v68_v7 = vand.u32 2147483647, %v66_v5 }
  0x12   :  { %v70_v8 = vadd.f32 %v68_v7, %v67_v6 }
  0x14   :  { %72 = vst [vmem:[#allocation7] sm:$0xff] %v70_v8 }
  0x15   :  { %83 = dma.vmem_to_hbm [thread:$0]  %s79_s1, 128, %s81_s23, [#allocation4]  }
  0x16   :  { %173 = dma.done.wait [#allocation4], 128  }
  0x17   :  { %174 = vsyncadd [#allocation4], 4294967168 }
  0x18   :  { %88 = vsyncpa [#allocation3], 1 }
  0x19   :  { %89 = vsyncpa [#allocation6], 1 }
  0x1a   :  { %90 = vsyncpa [#allocation4], 1 }

</bundles_post_ra>
